<compile_context>
chip_gen: v6e
topology: v6e:2x2x1
jax: 0.10.0
libtpu: 0.0.40
codegen_flags: <defaults>
</compile_context>

<pallas_src>
import functools

import jax
import jax.numpy as jnp
from jax.experimental import pallas as pl
from jax.experimental.pallas import tpu as pltpu


_LANE = 128
_SUB = 8
_BLOCK_ELEMS = (4 * 1024 * 1024) // 4        # ~4 MiB of f32 per tile
_FUSED_ELEMS = (2 * 1024 * 1024) // 4        # fused-train path: <=2 MiB f32
_VMEM_LIMIT = 32 * 1024 * 1024


def _round_up(x, m):
    return (x + m - 1) // m * m


def _cdiv(a, b):
    return -(-a // b)


def _tile_plan(R, L):
    """Pick (TR, TL, Rp, Lp): row/col tile sizes and padded extents."""
    if L * _SUB <= _BLOCK_ELEMS:
        # Keep full rows: lane-dense, no column padding (full-dim exception).
        TL, Lp = L, L
        tr_max = min(_round_up(R, _SUB),
                     max(_SUB, (_BLOCK_ELEMS // max(L, 1)) // _SUB * _SUB))
        nr = _cdiv(R, tr_max)                       # balance row tiles so the
        TR = _round_up(_cdiv(R, nr), _SUB)          # padded tail stays small
    else:
        # Very large H*W: tile the lane axis in 128-aligned chunks.
        TR = _SUB
        lp128 = _round_up(L, _LANE)
        max_tl = max(_LANE, (_BLOCK_ELEMS // _SUB) // _LANE * _LANE)
        ct = _cdiv(lp128, max_tl)
        TL = _round_up(_cdiv(lp128, ct), _LANE)
        Lp = TL * ct
        Rp = _round_up(R, TR)
        return TR, TL, Rp, Lp
    Rp = _round_up(R, TR)
    return TR, TL, Rp, Lp


# ----------------------------------------------------------------------------
# Pallas kernels
# ----------------------------------------------------------------------------
def _bn_prelu_kernel(x_ref, s_ref, b_ref, a_ref, o_ref):
    """Fused folded-BN affine + PReLU on a (TR, TL) tile.

    s/b/a are (TR, 1) per-row (i.e. per-channel) params broadcast over lanes.
    """
    y = x_ref[...].astype(jnp.float32) * s_ref[...] + b_ref[...]
    o_ref[...] = jnp.where(y >= 0.0, y, a_ref[...] * y).astype(o_ref.dtype)


def _row_stats_kernel(x_ref, sum_ref, sq_ref):
    """Per-row sum and sum-of-squares, accumulated over the column grid axis."""
    @pl.when(pl.program_id(1) == 0)
    def _():
        sum_ref[...] = jnp.zeros_like(sum_ref)
        sq_ref[...] = jnp.zeros_like(sq_ref)

    x = x_ref[...].astype(jnp.float32)
    sum_ref[...] += jnp.sum(x, axis=1, keepdims=True)
    sq_ref[...] += jnp.sum(x * x, axis=1, keepdims=True)


def _bn_prelu_train_fused_kernel(x_ref, g_ref, b_ref, a_ref, o_ref, *,
                                 eps, count):
    """Single-block training path: batch stats + BN + PReLU in one kernel.

    x is (N, C, L); g/b/a are (1, C, 1).  Everything resident in VMEM.
    """
    x = x_ref[...].astype(jnp.float32)
    s1 = jnp.sum(x, axis=2, keepdims=True)           # (N, C, 1)  lane reduce
    s2 = jnp.sum(x * x, axis=2, keepdims=True)
    mean = jnp.sum(s1, axis=0, keepdims=True) / count     # (1, C, 1)
    ex2 = jnp.sum(s2, axis=0, keepdims=True) / count
    var = jnp.maximum(ex2 - mean * mean, 0.0)              # biased variance
    scale = g_ref[...] * jax.lax.rsqrt(var + eps)
    bias = b_ref[...] - mean * scale
    y = x * scale + bias
    o_ref[...] = jnp.where(y >= 0.0, y, a_ref[...] * y).astype(o_ref.dtype)


# ----------------------------------------------------------------------------
# pallas_call builders (cached per static configuration)
# ----------------------------------------------------------------------------
@functools.lru_cache(maxsize=None)
def _build_bn_prelu_call(Rp, Lp, TR, TL, dtype_name):
    return pl.pallas_call(
        _bn_prelu_kernel,
        out_shape=jax.ShapeDtypeStruct((Rp, Lp), jnp.dtype(dtype_name)),
        grid=(Rp // TR, Lp // TL),
        in_specs=[
            pl.BlockSpec((TR, TL), lambda i, j: (i, j)),
            pl.BlockSpec((TR, 1), lambda i, j: (i, 0)),
            pl.BlockSpec((TR, 1), lambda i, j: (i, 0)),
            pl.BlockSpec((TR, 1), lambda i, j: (i, 0)),
        ],
        out_specs=pl.BlockSpec((TR, TL), lambda i, j: (i, j)),
        compiler_params=pltpu.CompilerParams(
            dimension_semantics=("parallel", "parallel"),
            vmem_limit_bytes=_VMEM_LIMIT),
    )


@functools.lru_cache(maxsize=None)
def _build_row_stats_call(Rp, Lp, TR, TL):
    return pl.pallas_call(
        _row_stats_kernel,
        out_shape=(jax.ShapeDtypeStruct((Rp, 1), jnp.float32),
                   jax.ShapeDtypeStruct((Rp, 1), jnp.float32)),
        grid=(Rp // TR, Lp // TL),
        in_specs=[pl.BlockSpec((TR, TL), lambda i, j: (i, j))],
        out_specs=(pl.BlockSpec((TR, 1), lambda i, j: (i, 0)),
                   pl.BlockSpec((TR, 1), lambda i, j: (i, 0))),
        compiler_params=pltpu.CompilerParams(
            dimension_semantics=("parallel", "arbitrary"),
            vmem_limit_bytes=_VMEM_LIMIT),
    )


@functools.lru_cache(maxsize=None)
def _build_fused_train_call(N, C, L, dtype_name, eps, count):
    kernel = functools.partial(_bn_prelu_train_fused_kernel,
                               eps=eps, count=count)
    return pl.pallas_call(
        kernel,
        out_shape=jax.ShapeDtypeStruct((N, C, L), jnp.dtype(dtype_name)),
        grid=(1,),
        in_specs=[
            pl.BlockSpec((N, C, L), lambda i: (0, 0, 0)),
            pl.BlockSpec((1, C, 1), lambda i: (0, 0, 0)),
            pl.BlockSpec((1, C, 1), lambda i: (0, 0, 0)),
            pl.BlockSpec((1, C, 1), lambda i: (0, 0, 0)),
        ],
        out_specs=pl.BlockSpec((N, C, L), lambda i: (0, 0, 0)),
        compiler_params=pltpu.CompilerParams(
            dimension_semantics=("arbitrary",),
            vmem_limit_bytes=_VMEM_LIMIT),
    )


# ----------------------------------------------------------------------------
# Forward pass
# ----------------------------------------------------------------------------
def bnprelu_forward(x_nchw, params, *, training=True, eps=1e-3):
    """BNPReLU.forward: BatchNorm2d(eps=1e-3) followed by per-channel PReLU.

    training=True  -> normalise with biased batch statistics (fresh-module default).
    training=False -> normalise with the provided running statistics (eval mode).
    """
    N, C, H, W = x_nchw.shape
    R, L = N * C, H * W

    gamma = params["weight"].astype(jnp.float32)
    beta = params["bias"].astype(jnp.float32)
    alpha = params["prelu_weight"].astype(jnp.float32)

    # --- fully fused single-block training path (1 HBM read + 1 write of x) ---
    if training and (N * C * L) <= _FUSED_ELEMS:
        x3 = x_nchw.reshape(N, C, L)
        call = _build_fused_train_call(N, C, L, str(x3.dtype),
                                       float(eps), float(N * L))
        out = call(x3,
                   gamma.reshape(1, C, 1),
                   beta.reshape(1, C, 1),
                   alpha.reshape(1, C, 1))
        return out.reshape(N, C, H, W)

    # --- general tiled path -------------------------------------------------
    x2 = x_nchw.reshape(R, L)                       # channels-as-rows, HW on lanes
    TR, TL, Rp, Lp = _tile_plan(R, L)
    x2p = x2 if (Rp, Lp) == (R, L) else jnp.pad(x2, ((0, Rp - R), (0, Lp - L)))

    if training:
        row_sum, row_sq = _build_row_stats_call(Rp, Lp, TR, TL)(x2p)
        ch_sum = row_sum[:R, 0].reshape(N, C).sum(axis=0)   # tiny C-elem combine in XLA
        ch_sq = row_sq[:R, 0].reshape(N, C).sum(axis=0)
        cnt = float(N * H * W)
        mean = ch_sum / cnt
        var = jnp.maximum(ch_sq / cnt - mean * mean, 0.0)   # biased var (PyTorch training norm)
    else:
        mean = params["running_mean"].astype(jnp.float32)
        var = params["running_var"].astype(jnp.float32)

    scale = gamma * jax.lax.rsqrt(var + eps)        # fold BN into a per-channel affine
    bias = beta - mean * scale

    def per_row(v):                                  # (C,) -> (Rp, 1) per-row copy
        rows = jnp.tile(v, N).reshape(R, 1)
        return rows if Rp == R else jnp.pad(rows, ((0, Rp - R), (0, 0)))

    out = _build_bn_prelu_call(Rp, Lp, TR, TL, str(x2.dtype))(
        x2p, per_row(scale), per_row(bias), per_row(alpha))
    return out[:R, :L].reshape(N, C, H, W)


# ----------------------------------------------------------------------------
# Pure-JAX reference (for the built-in correctness check)
# ----------------------------------------------------------------------------
def bnprelu_reference(x, params, *, training=True, eps=1e-3):
    if training:
        mean = jnp.mean(x, axis=(0, 2, 3))
        var = jnp.mean(jnp.square(x - mean[None, :, None, None]), axis=(0, 2, 3))
    else:
        mean, var = params["running_mean"], params["running_var"]
    inv = jax.lax.rsqrt(var + eps)
    y = (x - mean[None, :, None, None]) * inv[None, :, None, None]
    y = y * params["weight"][None, :, None, None] + params["bias"][None, :, None, None]
    a = params["prelu_weight"][None, :, None, None]
    return jnp.where(y >= 0, y, a * y)


# ----------------------------------------------------------------------------
if __name__ == "__main__":
    key = jax.random.PRNGKey(0)
    kx, kg, kb, km, kv, ka = jax.random.split(key, 6)

    N, C, H, W = 2, 4, 16, 16
    x = jax.random.normal(kx, (N, C, H, W), jnp.float32)
    params = {
        "weight": 1.0 + 0.1 * jax.random.normal(kg, (C,), jnp.float32),
        "bias": 0.1 * jax.random.normal(kb, (C,), jnp.float32),
        "running_mean": 0.1 * jax.random.normal(km, (C,), jnp.float32),
        "running_var": jnp.abs(1.0 + 0.1 * jax.random.normal(kv, (C,), jnp.float32)),
        "prelu_weight": jnp.full((C,), 0.25, jnp.float32)
                        + 0.05 * jax.random.normal(ka, (C,), jnp.float32),
    }

    fwd_train = jax.jit(functools.partial(bnprelu_forward, training=True))
    fwd_eval = jax.jit(functools.partial(bnprelu_forward, training=False))

    out_train = jax.block_until_ready(fwd_train(x, params))
    out_eval = jax.block_until_ready(fwd_eval(x, params))

    ref_train = bnprelu_reference(x, params, training=True)
    ref_eval = bnprelu_reference(x, params, training=False)

    assert out_train.shape == (N, C, H, W), out_train.shape
    assert out_eval.shape == (N, C, H, W), out_eval.shape
    assert bool(jnp.all(jnp.isfinite(out_train)))
    assert bool(jnp.all(jnp.isfinite(out_eval)))
    assert bool(jnp.allclose(out_train, ref_train, atol=1e-4, rtol=1e-4))
    assert bool(jnp.allclose(out_eval, ref_eval, atol=1e-4, rtol=1e-4))
    print("KERNEL_OK")
</pallas_src>

<mosaic_0001>
module attributes {stable_mosaic.version = 11 : i64} {
  func.func @_bn_prelu_train_fused_kernel(%arg0: i32, %arg1: memref<2x4x256xf32, #tpu.memory_space<vmem>>, %arg2: memref<1x4x1xf32, #tpu.memory_space<vmem>>, %arg3: memref<1x4x1xf32, #tpu.memory_space<vmem>>, %arg4: memref<1x4x1xf32, #tpu.memory_space<vmem>>, %arg5: memref<2x4x256xf32, #tpu.memory_space<vmem>>) attributes {dimension_semantics = [#tpu.dimension_semantics<arbitrary>], iteration_bounds = array<i64: 1>, scalar_prefetch = 0 : i64, scratch_operands = 0 : i64, tpu.core_type = #tpu.core_type<tc>, window_params = [{pipeline_mode = #tpu.pipeline_mode<synchronous>, transform_indices = @transform_0, window_bounds = array<i64: 2, 4, 256>}, {pipeline_mode = #tpu.pipeline_mode<synchronous>, transform_indices = @transform_1, window_bounds = array<i64: 1, 4, 1>}, {pipeline_mode = #tpu.pipeline_mode<synchronous>, transform_indices = @transform_2, window_bounds = array<i64: 1, 4, 1>}, {pipeline_mode = #tpu.pipeline_mode<synchronous>, transform_indices = @transform_3, window_bounds = array<i64: 1, 4, 1>}, {pipeline_mode = #tpu.pipeline_mode<synchronous>, transform_indices = @transform_4, window_bounds = array<i64: 2, 4, 256>}]} {
    %c0 = arith.constant 0 : index
    %c0_0 = arith.constant 0 : index
    %c0_1 = arith.constant 0 : index
    %0 = vector.load %arg1[%c0, %c0_0, %c0_1] : memref<2x4x256xf32, #tpu.memory_space<vmem>>, vector<2x4x256xf32>
    %cst = arith.constant dense<0.000000e+00> : vector<2x4xf32>
    %1 = vector.multi_reduction <add>, %0, %cst [2] : vector<2x4x256xf32> to vector<2x4xf32>
    %2 = vector.shape_cast %1 : vector<2x4xf32> to vector<2x4x1xf32>
    %3 = arith.mulf %0, %0 : vector<2x4x256xf32>
    %cst_2 = arith.constant dense<0.000000e+00> : vector<2x4xf32>
    %4 = vector.multi_reduction <add>, %3, %cst_2 [2] : vector<2x4x256xf32> to vector<2x4xf32>
    %5 = vector.shape_cast %4 : vector<2x4xf32> to vector<2x4x1xf32>
    %cst_3 = arith.constant dense<0.000000e+00> : vector<4x1xf32>
    %6 = vector.multi_reduction <add>, %2, %cst_3 [0] : vector<2x4x1xf32> to vector<4x1xf32>
    %7 = vector.shape_cast %6 : vector<4x1xf32> to vector<1x4x1xf32>
    %cst_4 = arith.constant 5.120000e+02 : f32
    %8 = vector.broadcast %cst_4 : f32 to vector<1x4x1xf32>
    %9 = arith.divf %7, %8 : vector<1x4x1xf32>
    %cst_5 = arith.constant dense<0.000000e+00> : vector<4x1xf32>
    %10 = vector.multi_reduction <add>, %5, %cst_5 [0] : vector<2x4x1xf32> to vector<4x1xf32>
    %11 = vector.shape_cast %10 : vector<4x1xf32> to vector<1x4x1xf32>
    %cst_6 = arith.constant 5.120000e+02 : f32
    %12 = vector.broadcast %cst_6 : f32 to vector<1x4x1xf32>
    %13 = arith.divf %11, %12 : vector<1x4x1xf32>
    %14 = arith.mulf %9, %9 : vector<1x4x1xf32>
    %15 = arith.subf %13, %14 : vector<1x4x1xf32>
    %cst_7 = arith.constant 0.000000e+00 : f32
    %16 = vector.broadcast %cst_7 : f32 to vector<1x4x1xf32>
    %17 = arith.maximumf %15, %16 : vector<1x4x1xf32>
    %c0_8 = arith.constant 0 : index
    %c0_9 = arith.constant 0 : index
    %c0_10 = arith.constant 0 : index
    %18 = vector.load %arg2[%c0_8, %c0_9, %c0_10] : memref<1x4x1xf32, #tpu.memory_space<vmem>>, vector<1x4x1xf32>
    %cst_11 = arith.constant 1.000000e-03 : f32
    %19 = vector.broadcast %cst_11 : f32 to vector<1x4x1xf32>
    %20 = arith.addf %17, %19 : vector<1x4x1xf32>
    %21 = math.rsqrt %20 : vector<1x4x1xf32>
    %22 = arith.mulf %18, %21 : vector<1x4x1xf32>
    %c0_12 = arith.constant 0 : index
    %c0_13 = arith.constant 0 : index
    %c0_14 = arith.constant 0 : index
    %23 = vector.load %arg3[%c0_12, %c0_13, %c0_14] : memref<1x4x1xf32, #tpu.memory_space<vmem>>, vector<1x4x1xf32>
    %24 = arith.mulf %9, %22 : vector<1x4x1xf32>
    %25 = arith.subf %23, %24 : vector<1x4x1xf32>
    %26 = vector.broadcast %22 : vector<1x4x1xf32> to vector<2x4x256xf32>
    %27 = arith.mulf %0, %26 : vector<2x4x256xf32>
    %28 = vector.broadcast %25 : vector<1x4x1xf32> to vector<2x4x256xf32>
    %29 = arith.addf %27, %28 : vector<2x4x256xf32>
    %cst_15 = arith.constant 0.000000e+00 : f32
    %30 = vector.broadcast %cst_15 : f32 to vector<2x4x256xf32>
    %31 = arith.cmpf oge, %29, %30 : vector<2x4x256xf32>
    %c0_16 = arith.constant 0 : index
    %c0_17 = arith.constant 0 : index
    %c0_18 = arith.constant 0 : index
    %32 = vector.load %arg4[%c0_16, %c0_17, %c0_18] : memref<1x4x1xf32, #tpu.memory_space<vmem>>, vector<1x4x1xf32>
    %33 = vector.broadcast %32 : vector<1x4x1xf32> to vector<2x4x256xf32>
    %34 = arith.mulf %33, %29 : vector<2x4x256xf32>
    %35 = arith.select %31, %29, %34 : vector<2x4x256xi1>, vector<2x4x256xf32>
    %c0_19 = arith.constant 0 : index
    %c0_20 = arith.constant 0 : index
    %c0_21 = arith.constant 0 : index
    %36 = vector.load %arg5[%c0_19, %c0_20, %c0_21] : memref<2x4x256xf32, #tpu.memory_space<vmem>>, vector<2x4x256xf32>
    tpu.vector_store %arg5[%c0_19, %c0_20, %c0_21], %35 {strides = array<i32>} : memref<2x4x256xf32, #tpu.memory_space<vmem>>, vector<2x4x256xf32>,
    return
  }
  func.func @transform_0(%arg0: i32) -> (i32, i32, i32) {
    %c0_i32 = arith.constant 0 : i32
    %c0_i32_0 = arith.constant 0 : i32
    %c0_i32_1 = arith.constant 0 : i32
    %c0_i32_2 = arith.constant 0 : i32
    return %c0_i32, %c0_i32_0, %c0_i32_1 : i32, i32, i32
  }
  func.func @transform_1(%arg0: i32) -> (i32, i32, i32) {
    %c0_i32 = arith.constant 0 : i32
    %c0_i32_0 = arith.constant 0 : i32
    %c0_i32_1 = arith.constant 0 : i32
    %c0_i32_2 = arith.constant 0 : i32
    return %c0_i32, %c0_i32_0, %c0_i32_1 : i32, i32, i32
  }
  func.func @transform_2(%arg0: i32) -> (i32, i32, i32) {
    %c0_i32 = arith.constant 0 : i32
    %c0_i32_0 = arith.constant 0 : i32
    %c0_i32_1 = arith.constant 0 : i32
    %c0_i32_2 = arith.constant 0 : i32
    return %c0_i32, %c0_i32_0, %c0_i32_1 : i32, i32, i32
  }
  func.func @transform_3(%arg0: i32) -> (i32, i32, i32) {
    %c0_i32 = arith.constant 0 : i32
    %c0_i32_0 = arith.constant 0 : i32
    %c0_i32_1 = arith.constant 0 : i32
    %c0_i32_2 = arith.constant 0 : i32
    return %c0_i32, %c0_i32_0, %c0_i32_1 : i32, i32, i32
  }
  func.func @transform_4(%arg0: i32) -> (i32, i32, i32) {
    %c0_i32 = arith.constant 0 : i32
    %c0_i32_0 = arith.constant 0 : i32
    %c0_i32_1 = arith.constant 0 : i32
    %c0_i32_2 = arith.constant 0 : i32
    return %c0_i32, %c0_i32_0, %c0_i32_1 : i32, i32, i32
  }
}

</mosaic_0001>

<bundles_post_ra>
// kernel: bnprelu_forward.1
= control target key start
LH: loop header
LB: loop body
LE: loop exit
PB: predicated region body
PF: predicated region fallthrough
CT: control target
= control target key end

     0   :  { %vm25_vm0 = vcmask 1043456   ;;  %v143_v20 = vmov 0   ;;  %v144_v44 = vmov 839922192   ;;  %v80_v46 = vlaneseq  ;;  %s219_s0 = inlined_call_operand.vmem [shape: f32[2,4,256], index: 0, kind: input, shape index: {}]   ;;  %s220_s1 = inlined_call_operand.vmem [shape: f32[1,4,1], index: 1, kind: input, shape index: {}]   ;;  %s221_s2 = inlined_call_operand.vmem [shape: f32[1,4,1], index: 2, kind: input, shape index: {}]   ;;  %s222_s3 = inlined_call_operand.vmem [shape: f32[1,4,1], index: 3, kind: input, shape index: {}]   ;;  %s223_s4 = inlined_call_operand.vmem [shape: f32[2,4,256], index: 4, kind: output, shape index: {}]  }
   0x1   :  { %v173_v0 = vld [vmem:[%s219_s0] sm:$0xff]  ;;  %v178_v1 = vld [vmem:[%s219_s0 + $0x8] sm:$0xff]  ;;  %137 = vset.pattern.permute.xlu0 %v143_v20  ;;  %138 = vset.pattern.permute.xlu1 %v143_v20  ;;  %v78_v45 = vunpack.c.l.s4 %v144_v44 }
   0x2   :  { %v21_v2 = vcombine.high %v173_v0, %v173_v0  ;;  %v26_v3 = vsel %vm25_vm0, %v173_v0, 0.0  ;;  %v36_v4 = vmul.f32 %v173_v0, %v173_v0  ;;  %v22_v5 = vcombine.high %v178_v1, %v178_v1  ;;  %v66_v37 = vld [vmem:[%s220_s1] sm:$0xf] }
   0x3   :  { %v31_v6 = vsel %vm25_vm0, %v178_v1, 0.0  ;;  %v37_v7 = vmul.f32 %v178_v1, %v178_v1  ;;  %v70_v40 = vld [vmem:[%s221_s2] sm:$0xf]  ;;  %v79_v47 = vunpack.c.0.s8 %v78_v45  ;;  %v81_v48 = vshrl.u32 %v80_v46, 7 }
   0x4   :  { %v27_v8 = vsel %vm25_vm0, %v21_v2, 0.0  ;;  %v40_v9 = vcombine.high %v36_v4, %v36_v4  ;;  %v44_v10 = vsel %vm25_vm0, %v36_v4, 0.0  ;;  %v32_v11 = vsel %vm25_vm0, %v22_v5, 0.0  ;;  %v103_v43 = vld [vmem:[%s222_s3] sm:$0xf] }
   0x5   :  { %v28_v12 = vadd.f32 %v27_v8, %v26_v3  ;;  %v41_v13 = vcombine.high %v37_v7, %v37_v7  ;;  %v49_v15 = vsel %vm25_vm0, %v37_v7, 0.0  ;;  %v33_v17 = vadd.f32 %v32_v11, %v31_v6 }
   0x6   :  { %v45_v14 = vsel %vm25_vm0, %v40_v9, 0.0  ;;  %v82_v49 = vsub.s32 %v79_v47, %v81_v48 }
   0x7   :  { %29 = vadd.xlane.f32.xlu0 %v28_v12  ;;  %v46_v16 = vadd.f32 %v45_v14, %v44_v10  ;;  %v50_v18 = vsel %vm25_vm0, %v41_v13, 0.0 }
   0x8   :  { %v51_v19 = vadd.f32 %v50_v18, %v49_v15 }
   0x9   :  { %47 = vadd.xlane.f32.xlu1 %v46_v16 }
   0xb   :  { %34 = vadd.xlane.f32.xlu0 %v33_v17 }
   0xd   :  { %52 = vadd.xlane.f32.xlu1 %v51_v19 }
  0x90   :  { %v30_v21 = vpop.xlane.xlu0 %29 }
  0x91   :  { %v54_v24 = vsel %vm25_vm0, %v30_v21, 0.0 }
  0x92   :  { %v48_v22 = vpop.xlane.xlu1 %47 }
  0x93   :  { %v59_v28 = vsel %vm25_vm0, %v48_v22, 0.0 }
  0x94   :  { %v35_v23 = vpop.xlane.xlu0 %34 }
  0x95   :  { %v55_v25 = vsel %vm25_vm0, %v35_v23, 0.0 }
  0x96   :  { %v56_v26 = vadd.f32 %v55_v25, %v54_v24  ;;  %v53_v27 = vpop.xlane.xlu1 %52 }
  0x97   :  { %v60_v29 = vsel %vm25_vm0, %v53_v27, 0.0 }
  0x98   :  { %v58_v30 = vmul.f32 0.001953125, %v56_v26  ;;  %v61_v31 = vadd.f32 %v60_v29, %v59_v28 }
  0x9a   :  { %v63_v32 = vmul.f32 %v58_v30, %v58_v30  ;;  %v62_v33 = vmul.f32 0.001953125, %v61_v31 }
  0x9c   :  { %v64_v34 = vsub.f32 %v62_v33, %v63_v32 }
  0x9e   :  { %v65_v35 = vmax.f32 %v64_v34, 0.0 }
  0xa0   :  { %v67_v36 = vadd.f32 0.001, %v65_v35 }
  0xa2   :  { %141 = vrsqrt.f32 %v67_v36 }
  0xaf   :  { %v142_v38 = vpop.eup %141 }
  0xb0   :  { %v69_v39 = vmul.f32 %v142_v38, %v66_v37 }
  0xb2   :  { %75 = vperm.xlu0 %137, %v69_v39   ;;  %v71_v41 = vmul.f32 %v69_v39, %v58_v30 }
  0xb4   :  { %v72_v42 = vsub.f32 %v70_v40, %v71_v41 }
  0xb6   :  { %89 = vperm.xlu1 %138, %v72_v42  }
  0xba   :  { %106 = vperm.xlu1 %138, %v103_v43  }
 0x12d   :  { %v76_v50 = vpop.permute.xlu0 %75 }
 0x12e   :  { %v83_v51 = vrot.slane %v76_v50, %v82_v49 }
 0x130   :  { %v85_v53 = vmul.f32 %v83_v51, %v173_v0  ;;  %v86_v54 = vmul.f32 %v83_v51, %v178_v1 }
 0x131   :  { %v90_v52 = vpop.permute.xlu1 %89 }
 0x132   :  { %v97_v55 = vrot.slane %v90_v52, %v82_v49 }
 0x134   :  { %v99_v56 = vadd.f32 %v97_v55, %v85_v53  ;;  %v100_v57 = vadd.f32 %v97_v55, %v86_v54 }
 0x135   :  { %v107_v58 = vpop.permute.xlu1 %106 }
 0x136   :  { %v111_v59 = vcombine.high %v99_v56, %v99_v56  ;;  %v112_v60 = vcombine.high %v100_v57, %v100_v57  ;;  %v115_v61 = vmul.f32 %v107_v58, %v99_v56  ;;  %v117_v63 = vmul.f32 %v107_v58, %v100_v57 }
 0x137   :  { %vm101_vm1 = vcmp.ge.f32.partialorder %v99_v56, 0.0  ;;  %vm102_vm2 = vcmp.ge.f32.partialorder %v100_v57, 0.0 }
 0x138   :  { %v116_v62 = vmul.f32 %v111_v59, %v107_v58  ;;  %v118_v2 = vmul.f32 %v112_v60, %v107_v58 }
 0x13a   :  { %v123_v3 = vcombine.low %v115_v61, %v116_v62  ;;  %v124_v4 = vcombine.low %v117_v63, %v118_v2 }
 0x13c   :  { %v127_v5 = vsel %vm101_vm1, %v99_v56, %v123_v3  ;;  %v128_v6 = vsel %vm102_vm2, %v100_v57, %v124_v4 }
 0x13d   :  { %129 = vst [vmem:[%s223_s4] sm:$0xff] %v127_v5  ;;  %130 = vst [vmem:[%s223_s4 + $0x8] sm:$0xff] %v128_v6 }

</bundles_post_ra>
